<compile_context>
chip_gen: v6e
topology: v6e:2x2x1
jax: 0.10.0
libtpu: 0.0.40
codegen_flags: <defaults>
</compile_context>

<pallas_src>
import functools

import jax
import jax.numpy as jnp
from jax import lax
from jax.experimental import pallas as pl
from jax.experimental.pallas import tpu as pltpu

_MIB = 1 << 20
_RES_INFLIGHT = 2  # input-chunk DMAs in flight inside the resident pool step


def _vmem_capacity_bytes():
    """Physical VMEM per core; conservative 64 MiB (v7x) fallback."""
    try:
        return int(pltpu.get_tpu_info().vmem_capacity_bytes)
    except Exception:
        return 64 * _MIB


def _clamp_vmem(limit_bytes, cap_bytes):
    return int(min(max(limit_bytes, 32 * _MIB), cap_bytes))


def _cdiv(a, b):
    return -(-a // b)


def _lane_tile(c, itemsize, hw, target_bytes, max_bytes):
    """Lane tile: multiple of 128, ~target_bytes per (C, T) slab, never wider
    than the 128-rounded-down spatial extent (avoids blocks wider than HW)."""
    cap_lanes = max(128, min(target_bytes, max_bytes) // (c * itemsize))
    t = max(128, (cap_lanes // 128) * 128)
    return int(min(t, max(128, (hw // 128) * 128)))


# ------------------------------ squeeze-excite -------------------------------

def _squeeze_excite(y, w1t, b1, w2, b2):
    """Pooled means (..., C, 1) -> sigmoid attention (..., C, 1) in f32.

    Cr <= C are tiny, so run the 1x1-conv MLP on the VPU via
    broadcast-multiply + reduce instead of degenerate 1-lane MXU matmuls.
    w1t: (C, Cr) first conv weight transposed; b1: (1, Cr); w2: (C, Cr);
    b2: (C, 1).
    """
    w1t = w1t.astype(jnp.float32)
    b1 = b1.astype(jnp.float32)
    w2 = w2.astype(jnp.float32)
    b2 = b2.astype(jnp.float32)
    h = jnp.sum(w1t * y, axis=-2, keepdims=True) + b1      # (..., 1, Cr)
    h = jnp.maximum(h, 0.0)
    z = jnp.sum(w2 * h, axis=-1, keepdims=True) + b2       # (..., C, 1)
    return jax.nn.sigmoid(z)


# ------------------------------- fused kernel --------------------------------

def _ca_fused_kernel(x_ref, w1t_ref, b1_ref, w2_ref, b2_ref, o_ref, *, inv_hw):
    x = x_ref[...]                                               # (B, C, HW)
    # f32 cast only for the pooling accumulation.
    s = jnp.sum(x.astype(jnp.float32), axis=-1, keepdims=True)   # (B, C, 1)
    att = _squeeze_excite(s * inv_hw, w1t_ref[...], b1_ref[...],
                          w2_ref[...], b2_ref[...])              # (B, C, 1) f32
    # Rescale in the input dtype (no second full-block f32 materialization).
    o_ref[...] = x * att.astype(o_ref.dtype)


def _ca_fused(x3, params, B, inv_hw, vmem_cap):
    N, C, HW = x3.shape
    w1t, b1r, w2m, b2c = params
    Cr = w1t.shape[1]
    itemsize = jnp.dtype(x3.dtype).itemsize
    steps = _cdiv(N, B)
    need = B * C * HW * (4 * itemsize + 4) + 16 * _MIB
    return pl.pallas_call(
        functools.partial(_ca_fused_kernel, inv_hw=inv_hw),
        out_shape=jax.ShapeDtypeStruct((N, C, HW), x3.dtype),
        grid_spec=pltpu.PrefetchScalarGridSpec(
            num_scalar_prefetch=0,
            grid=(steps,),
            in_specs=[
                pl.BlockSpec((B, C, HW), lambda i: (i, 0, 0)),
                pl.BlockSpec((C, Cr), lambda i: (0, 0)),
                pl.BlockSpec((1, Cr), lambda i: (0, 0)),
                pl.BlockSpec((C, Cr), lambda i: (0, 0)),
                pl.BlockSpec((C, 1), lambda i: (0, 0)),
            ],
            out_specs=pl.BlockSpec((B, C, HW), lambda i: (i, 0, 0)),
        ),
        compiler_params=pltpu.CompilerParams(
            dimension_semantics=("parallel",),
            vmem_limit_bytes=_clamp_vmem(need, vmem_cap)),
    )(x3, w1t, b1r, w2m, b2c)


# ------------------------- resident-image kernel (v7x) -----------------------

def _ca_resident_kernel(x_hbm, w1t_ref, b1_ref, w2_ref, b2_ref, o_ref,
                        img, acc_ref, att_ref, sems, *,
                        chunk, n_full, tail, inv_hw, nif):
    n = pl.program_id(0)
    t = pl.program_id(1)

    @pl.when(t == 0)
    def _pool_and_attend():
        def start_chunk(k, slot):
            pltpu.make_async_copy(
                x_hbm.at[n, :, pl.ds(k * chunk, chunk)],
                img.at[:, pl.ds(k * chunk, chunk)],
                sems.at[slot]).start()

        def wait_chunk(slot):
            # Shape-matching descriptor; only the semaphore matters for wait.
            pltpu.make_async_copy(
                x_hbm.at[0, :, pl.ds(0, chunk)],
                img.at[:, pl.ds(0, chunk)],
                sems.at[slot]).wait()

        # Prime the in-flight window; the ragged tail gets its own DMA + sem.
        for k in range(min(nif, n_full)):
            start_chunk(k, k)
        if tail > 0:
            pltpu.make_async_copy(
                x_hbm.at[n, :, pl.ds(n_full * chunk, tail)],
                img.at[:, pl.ds(n_full * chunk, tail)],
                sems.at[nif]).start()

        acc_ref[...] = jnp.zeros_like(acc_ref)

        if n_full > 0:
            @pl.loop(0, n_full)
            def _(s):
                slot = s % nif
                wait_chunk(slot)
                off = pl.multiple_of(s * chunk, 128)
                acc_ref[...] += jnp.sum(
                    img[:, pl.ds(off, chunk)].astype(jnp.float32),
                    axis=-1, keepdims=True)

                @pl.when(s + nif < n_full)
                def _():
                    start_chunk(s + nif, slot)

        if tail > 0:
            off0 = n_full * chunk
            pltpu.make_async_copy(
                x_hbm.at[0, :, pl.ds(0, tail)],
                img.at[:, pl.ds(0, tail)],
                sems.at[nif]).wait()
            xt = img[:, pl.ds(off0, chunk)].astype(jnp.float32)
            col = lax.broadcasted_iota(jnp.int32, xt.shape, 1)
            acc_ref[...] += jnp.sum(jnp.where(col < tail, xt, 0.0),
                                    axis=-1, keepdims=True)

        att_ref[...] = _squeeze_excite(acc_ref[...] * inv_hw, w1t_ref[...],
                                       b1_ref[...], w2_ref[...], b2_ref[...])

    # Every step (t = 0 .. nc-1): rescale chunk t out of the resident copy.
    # The last (partial) output block's out-of-bounds lanes are dropped.
    off = pl.multiple_of(t * chunk, 128)
    o_ref[0] = img[:, pl.ds(off, chunk)] * att_ref[...].astype(o_ref.dtype)


def _ca_resident(x3, params, chunk, inv_hw, vmem_cap):
    N, C, HW = x3.shape
    w1t, b1r, w2m, b2c = params
    Cr = w1t.shape[1]
    itemsize = jnp.dtype(x3.dtype).itemsize
    nc = _cdiv(HW, chunk)
    hw_pad = nc * chunk
    n_full, tail = divmod(HW, chunk)
    need = (C * hw_pad * itemsize + 4 * C * chunk * itemsize
            + 4 * C * chunk * 4 + 16 * _MIB)
    kernel = functools.partial(_ca_resident_kernel, chunk=chunk, n_full=n_full,
                               tail=tail, inv_hw=inv_hw, nif=_RES_INFLIGHT)
    return pl.pallas_call(
        kernel,
        out_shape=jax.ShapeDtypeStruct((N, C, HW), x3.dtype),
        grid_spec=pltpu.PrefetchScalarGridSpec(
            num_scalar_prefetch=0,
            grid=(N, nc),
            in_specs=[
                pl.BlockSpec(memory_space=pl.ANY),      # x stays in HBM
                pl.BlockSpec((C, Cr), lambda n, t: (0, 0)),
                pl.BlockSpec((1, Cr), lambda n, t: (0, 0)),
                pl.BlockSpec((C, Cr), lambda n, t: (0, 0)),
                pl.BlockSpec((C, 1), lambda n, t: (0, 0)),
            ],
            out_specs=pl.BlockSpec((1, C, chunk), lambda n, t: (n, 0, t)),
            scratch_shapes=[
                pltpu.VMEM((C, hw_pad), x3.dtype),      # resident image
                pltpu.VMEM((C, 1), jnp.float32),        # pooled-sum accumulator
                pltpu.VMEM((C, 1), jnp.float32),        # attention (lives over t)
                pltpu.SemaphoreType.DMA((_RES_INFLIGHT + 1,)),
            ],
        ),
        compiler_params=pltpu.CompilerParams(
            dimension_semantics=("parallel", "arbitrary"),
            vmem_limit_bytes=_clamp_vmem(need, vmem_cap)),
    )(x3, w1t, b1r, w2m, b2c)


# ---------------------------- tiled two-pass kernels --------------------------

def _ca_pool_kernel(x_ref, sum_ref, *, hw, tile, ragged):
    t = pl.program_id(1)

    @pl.when(t == 0)
    def _init():
        sum_ref[...] = jnp.zeros_like(sum_ref)

    x = x_ref[0].astype(jnp.float32)                     # (C, T)
    if ragged:
        # Ragged last tile: Pallas pads partial input blocks with undefined
        # data, so mask out-of-range lanes before accumulating.
        col = lax.broadcasted_iota(jnp.int32, x.shape, 1)
        x = jnp.where(col < hw - t * tile, x, 0.0)
    sum_ref[0] += jnp.sum(x, axis=-1, keepdims=True)     # (C, 1)


def _ca_apply_kernel(x_ref, att_ref, o_ref):
    # Out-of-bounds lanes of a partial last block are dropped on writeback.
    o_ref[0] = x_ref[0] * att_ref[0].astype(o_ref.dtype)


def _ca_tiled(x3, params, inv_hw, budget, vmem_cap):
    N, C, HW = x3.shape
    w1t, b1r, w2m, b2c = params
    itemsize = jnp.dtype(x3.dtype).itemsize

    # Lane-dense spatial tile targeting ~8 MiB (C, T) slabs (no 8192-lane cap);
    # the apply pass double-buffers in + out (4 slabs) plus f32 temps.
    T = _lane_tile(C, itemsize, HW, target_bytes=8 * _MIB,
                   max_bytes=budget // 8)
    nt = _cdiv(HW, T)
    ragged = (HW % T) != 0
    tile_bytes = C * T * itemsize
    limit = _clamp_vmem(4 * tile_bytes + 3 * C * T * 4 + 16 * _MIB, vmem_cap)

    # Pass 1: pooled sums only (the squeeze-excite MLP stays out of the
    # streaming kernel; it runs on the tiny pooled tensor in plain JAX below).
    sums = pl.pallas_call(
        functools.partial(_ca_pool_kernel, hw=HW, tile=T, ragged=ragged),
        out_shape=jax.ShapeDtypeStruct((N, C, 1), jnp.float32),
        grid_spec=pltpu.PrefetchScalarGridSpec(
            num_scalar_prefetch=0,
            grid=(N, nt),
            in_specs=[pl.BlockSpec((1, C, T), lambda n, t: (n, 0, t))],
            out_specs=pl.BlockSpec((1, C, 1), lambda n, t: (n, 0, 0)),
        ),
        compiler_params=pltpu.CompilerParams(
            dimension_semantics=("parallel", "arbitrary"),
            vmem_limit_bytes=limit),
    )(x3)

    att = _squeeze_excite(sums * inv_hw, w1t, b1r, w2m, b2c)   # (N, C, 1) f32

    # Pass 2: elementwise rescale, fully parallel grid (megacore-friendly).
    return pl.pallas_call(
        _ca_apply_kernel,
        out_shape=jax.ShapeDtypeStruct((N, C, HW), x3.dtype),
        grid_spec=pltpu.PrefetchScalarGridSpec(
            num_scalar_prefetch=0,
            grid=(N, nt),
            in_specs=[
                pl.BlockSpec((1, C, T), lambda n, t: (n, 0, t)),
                pl.BlockSpec((1, C, 1), lambda n, t: (n, 0, 0)),
            ],
            out_specs=pl.BlockSpec((1, C, T), lambda n, t: (n, 0, t)),
        ),
        compiler_params=pltpu.CompilerParams(
            dimension_semantics=("parallel", "parallel"),
            vmem_limit_bytes=limit),
    )(x3, att)


# ----------------------------------- wrapper ---------------------------------

def ca_layer(x, w1, b1, w2, b2, *, path=None):
    """Channel attention: out = x * sigmoid(conv2(relu(conv1(avgpool(x))))).

    x : (N, C, H, W)
    w1: (Cr, C)  first 1x1 conv weight (squeezed),  b1: (Cr,)
    w2: (C, Cr)  second 1x1 conv weight (squeezed), b2: (C,)
    path: None (auto) | "fused" | "resident" | "tiled".
    """
    N, C, H, W = x.shape
    HW = H * W
    Cr = w1.shape[0]
    itemsize = jnp.dtype(x.dtype).itemsize
    inv_hw = 1.0 / float(HW)

    # Parameter layouts for the VPU squeeze-excite (no 1-lane MXU matmuls).
    w1t = jnp.asarray(w1).T.reshape(C, Cr)          # (C, Cr)
    b1r = jnp.asarray(b1).reshape(1, Cr)            # (1, Cr) lane-major
    w2m = jnp.asarray(w2).reshape(C, Cr)            # (C, Cr)
    b2c = jnp.asarray(b2).reshape(C, 1)             # (C, 1)
    params = (w1t, b1r, w2m, b2c)

    vmem_cap = _vmem_capacity_bytes()
    budget = (3 * vmem_cap) // 4
    param_bytes = 2 * 4 * (2 * C * Cr + Cr + C)

    x3 = x.reshape(N, C, HW)
    per_img = C * HW * itemsize

    def _fused_batch():
        # 2x in + 2x out double-buffered blocks + an f32 pooling temp.
        per_b = 4 * per_img + C * HW * 4
        if per_b + param_bytes + _MIB > budget:
            return 0
        b_vmem = max(1, (budget - param_bytes - _MIB) // per_b)
        b_amort = max(1, _cdiv(2 * _MIB, per_img))   # amortize per-step overhead
        b = min(N, b_vmem, b_amort)
        if N >= 2:
            b = min(b, _cdiv(N, 2))                  # >= 2 steps for v7x megacore
        return max(b, 1)

    # Resident-path chunk (multiple of 128 lanes) and feasibility.
    chunk = _lane_tile(C, itemsize, HW, target_bytes=2 * _MIB,
                       max_bytes=budget // 8)
    hw_pad = _cdiv(HW, chunk) * chunk
    resident_need = (C * hw_pad * itemsize          # 1x resident image
                     + 4 * C * chunk * itemsize     # out double-buffer + slack
                     + 3 * C * chunk * 4            # f32 pooling temps
                     + param_bytes + 2 * _MIB)

    if path is None:
        if _fused_batch() > 0:
            path = "fused"
        elif resident_need <= budget:
            path = "resident"
        else:
            path = "tiled"

    if path == "fused":
        B = _fused_batch() or 1
        out3 = _ca_fused(x3, params, B, inv_hw, vmem_cap)
    elif path == "resident":
        out3 = _ca_resident(x3, params, chunk, inv_hw, vmem_cap)
    elif path == "tiled":
        out3 = _ca_tiled(x3, params, inv_hw, budget, vmem_cap)
    else:
        raise ValueError(f"unknown path: {path!r}")
    return out3.reshape(N, C, H, W)


# ---------------------------------- reference ---------------------------------

def _reference(x, w1, b1, w2, b2):
    y = jnp.mean(x, axis=(2, 3), keepdims=True)                    # (N,C,1,1)
    h = jnp.einsum("rc,ncij->nrij", w1, y) + b1[None, :, None, None]
    h = jnp.maximum(h, 0.0)
    z = jnp.einsum("cr,nrij->ncij", w2, h) + b2[None, :, None, None]
    return x * jax.nn.sigmoid(z)


if __name__ == "__main__":
    # Small shapes consistent with the module: channel=32, reduction=16.
    N, C, H, W = 2, 32, 16, 16
    reduction = 16
    Cr = C // reduction

    key = jax.random.PRNGKey(0)
    kx, k1, kb1, k2, kb2 = jax.random.split(key, 5)

    x = jax.random.normal(kx, (N, C, H, W), dtype=jnp.float32)
    w1 = jax.random.normal(k1, (Cr, C), dtype=jnp.float32) * 0.1
    b1 = jax.random.normal(kb1, (Cr,), dtype=jnp.float32) * 0.1
    w2 = jax.random.normal(k2, (C, Cr), dtype=jnp.float32) * 0.1
    b2 = jax.random.normal(kb2, (C,), dtype=jnp.float32) * 0.1

    ref = _reference(x, w1, b1, w2, b2)

    # Auto path (fused, batched per grid step).
    out_auto = jax.block_until_ready(ca_layer(x, w1, b1, w2, b2))
    assert out_auto.shape == x.shape
    assert jnp.allclose(out_auto, ref, atol=1e-5, rtol=1e-5)

    # Resident-image path (manual chunked DMA into a full-image VMEM scratch).
    out_res = jax.block_until_ready(ca_layer(x, w1, b1, w2, b2, path="resident"))
    assert jnp.allclose(out_res, ref, atol=1e-5, rtol=1e-5)

    # Tiled two-pass path.
    out_tiled = jax.block_until_ready(ca_layer(x, w1, b1, w2, b2, path="tiled"))
    assert jnp.allclose(out_tiled, ref, atol=1e-5, rtol=1e-5)

    # Ragged spatial extent (H*W = 180, not a multiple of 128) and a batched
    # fused path with a partial leading block (N=5 -> B=3): exercises the
    # in-kernel lane masks and Pallas partial-block handling (no jnp.pad).
    N2, H2, W2 = 5, 9, 20
    x2 = jax.random.normal(kx, (N2, C, H2, W2), dtype=jnp.float32)
    ref2 = _reference(x2, w1, b1, w2, b2)

    out2_auto = jax.block_until_ready(ca_layer(x2, w1, b1, w2, b2))
    assert jnp.allclose(out2_auto, ref2, atol=1e-5, rtol=1e-5)
    out2_tiled = jax.block_until_ready(ca_layer(x2, w1, b1, w2, b2, path="tiled"))
    assert jnp.allclose(out2_tiled, ref2, atol=1e-5, rtol=1e-5)
    out2_res = jax.block_until_ready(ca_layer(x2, w1, b1, w2, b2, path="resident"))
    assert jnp.allclose(out2_res, ref2, atol=1e-5, rtol=1e-5)

    print("KERNEL_OK")
</pallas_src>

<mosaic_0001>
module attributes {stable_mosaic.version = 11 : i64} {
  func.func @_ca_fused_kernel(%arg0: i32, %arg1: memref<1x32x256xf32, #tpu.memory_space<vmem>>, %arg2: memref<32x2xf32, #tpu.memory_space<vmem>>, %arg3: memref<1x2xf32, #tpu.memory_space<vmem>>, %arg4: memref<32x2xf32, #tpu.memory_space<vmem>>, %arg5: memref<32x1xf32, #tpu.memory_space<vmem>>, %arg6: memref<1x32x256xf32, #tpu.memory_space<vmem>>) attributes {dimension_semantics = [#tpu.dimension_semantics<parallel>], iteration_bounds = array<i64: 2>, scalar_prefetch = 0 : i64, scratch_operands = 0 : i64, tpu.core_type = #tpu.core_type<tc>, window_params = [{transform_indices = @transform_0, window_bounds = array<i64: 1, 32, 256>}, {pipeline_mode = #tpu.pipeline_mode<synchronous>, transform_indices = @transform_1, window_bounds = array<i64: 32, 2>}, {pipeline_mode = #tpu.pipeline_mode<synchronous>, transform_indices = @transform_2, window_bounds = array<i64: 1, 2>}, {pipeline_mode = #tpu.pipeline_mode<synchronous>, transform_indices = @transform_3, window_bounds = array<i64: 32, 2>}, {pipeline_mode = #tpu.pipeline_mode<synchronous>, transform_indices = @transform_4, window_bounds = array<i64: 32, 1>}, {transform_indices = @transform_5, window_bounds = array<i64: 1, 32, 256>}]} {
    %c0 = arith.constant 0 : index
    %c0_0 = arith.constant 0 : index
    %c0_1 = arith.constant 0 : index
    %0 = vector.load %arg1[%c0, %c0_0, %c0_1] : memref<1x32x256xf32, #tpu.memory_space<vmem>>, vector<1x32x256xf32>
    %cst = arith.constant dense<0.000000e+00> : vector<1x32xf32>
    %1 = vector.multi_reduction <add>, %0, %cst [2] : vector<1x32x256xf32> to vector<1x32xf32>
    %2 = vector.shape_cast %1 : vector<1x32xf32> to vector<1x32x1xf32>
    %cst_2 = arith.constant 3.906250e-03 : f32
    %3 = vector.broadcast %cst_2 : f32 to vector<1x32x1xf32>
    %4 = arith.mulf %2, %3 : vector<1x32x1xf32>
    %c0_3 = arith.constant 0 : index
    %c0_4 = arith.constant 0 : index
    %5 = vector.load %arg2[%c0_3, %c0_4] : memref<32x2xf32, #tpu.memory_space<vmem>>, vector<32x2xf32>
    %c0_5 = arith.constant 0 : index
    %c0_6 = arith.constant 0 : index
    %6 = vector.load %arg3[%c0_5, %c0_6] : memref<1x2xf32, #tpu.memory_space<vmem>>, vector<1x2xf32>
    %c0_7 = arith.constant 0 : index
    %c0_8 = arith.constant 0 : index
    %7 = vector.load %arg4[%c0_7, %c0_8] : memref<32x2xf32, #tpu.memory_space<vmem>>, vector<32x2xf32>
    %c0_9 = arith.constant 0 : index
    %c0_10 = arith.constant 0 : index
    %8 = vector.load %arg5[%c0_9, %c0_10] : memref<32x1xf32, #tpu.memory_space<vmem>>, vector<32x1xf32>
    %9 = vector.shape_cast %5 : vector<32x2xf32> to vector<1x32x2xf32>
    %10 = vector.broadcast %4 : vector<1x32x1xf32> to vector<1x32x2xf32>
    %11 = arith.mulf %9, %10 : vector<1x32x2xf32>
    %cst_11 = arith.constant dense<0.000000e+00> : vector<1x2xf32>
    %12 = vector.multi_reduction <add>, %11, %cst_11 [1] : vector<1x32x2xf32> to vector<1x2xf32>
    %13 = vector.shape_cast %12 : vector<1x2xf32> to vector<1x1x2xf32>
    %14 = vector.shape_cast %6 : vector<1x2xf32> to vector<1x1x2xf32>
    %15 = arith.addf %13, %14 : vector<1x1x2xf32>
    %cst_12 = arith.constant 0.000000e+00 : f32
    %16 = vector.broadcast %cst_12 : f32 to vector<1x1x2xf32>
    %17 = arith.maximumf %15, %16 : vector<1x1x2xf32>
    %18 = vector.shape_cast %7 : vector<32x2xf32> to vector<1x32x2xf32>
    %19 = vector.broadcast %17 : vector<1x1x2xf32> to vector<1x32x2xf32>
    %20 = arith.mulf %18, %19 : vector<1x32x2xf32>
    %cst_13 = arith.constant dense<0.000000e+00> : vector<1x32xf32>
    %21 = vector.multi_reduction <add>, %20, %cst_13 [2] : vector<1x32x2xf32> to vector<1x32xf32>
    %22 = vector.shape_cast %21 : vector<1x32xf32> to vector<1x32x1xf32>
    %23 = vector.shape_cast %8 : vector<32x1xf32> to vector<1x32x1xf32>
    %24 = arith.addf %22, %23 : vector<1x32x1xf32>
    %25 = arith.negf %24 : vector<1x32x1xf32>
    %26 = math.exp %25 : vector<1x32x1xf32>
    %cst_14 = arith.constant 1.000000e+00 : f32
    %27 = vector.broadcast %cst_14 : f32 to vector<1x32x1xf32>
    %28 = arith.addf %27, %26 : vector<1x32x1xf32>
    %29 = arith.divf %27, %28 : vector<1x32x1xf32>
    %30 = vector.broadcast %29 : vector<1x32x1xf32> to vector<1x32x256xf32>
    %31 = arith.mulf %0, %30 : vector<1x32x256xf32>
    %c0_15 = arith.constant 0 : index
    %c0_16 = arith.constant 0 : index
    %c0_17 = arith.constant 0 : index
    %32 = vector.load %arg6[%c0_15, %c0_16, %c0_17] : memref<1x32x256xf32, #tpu.memory_space<vmem>>, vector<1x32x256xf32>
    tpu.vector_store %arg6[%c0_15, %c0_16, %c0_17], %31 {strides = array<i32>} : memref<1x32x256xf32, #tpu.memory_space<vmem>>, vector<1x32x256xf32>,
    return
  }
  func.func @transform_0(%arg0: i32) -> (i32, i32, i32) {
    %c0_i32 = arith.constant 0 : i32
    %c0_i32_0 = arith.constant 0 : i32
    %c0_i32_1 = arith.constant 0 : i32
    return %arg0, %c0_i32, %c0_i32_0 : i32, i32, i32
  }
  func.func @transform_1(%arg0: i32) -> (i32, i32) {
    %c0_i32 = arith.constant 0 : i32
    %c0_i32_0 = arith.constant 0 : i32
    %c0_i32_1 = arith.constant 0 : i32
    return %c0_i32, %c0_i32_0 : i32, i32
  }
  func.func @transform_2(%arg0: i32) -> (i32, i32) {
    %c0_i32 = arith.constant 0 : i32
    %c0_i32_0 = arith.constant 0 : i32
    %c0_i32_1 = arith.constant 0 : i32
    return %c0_i32, %c0_i32_0 : i32, i32
  }
  func.func @transform_3(%arg0: i32) -> (i32, i32) {
    %c0_i32 = arith.constant 0 : i32
    %c0_i32_0 = arith.constant 0 : i32
    %c0_i32_1 = arith.constant 0 : i32
    return %c0_i32, %c0_i32_0 : i32, i32
  }
  func.func @transform_4(%arg0: i32) -> (i32, i32) {
    %c0_i32 = arith.constant 0 : i32
    %c0_i32_0 = arith.constant 0 : i32
    %c0_i32_1 = arith.constant 0 : i32
    return %c0_i32, %c0_i32_0 : i32, i32
  }
  func.func @transform_5(%arg0: i32) -> (i32, i32, i32) {
    %c0_i32 = arith.constant 0 : i32
    %c0_i32_0 = arith.constant 0 : i32
    %c0_i32_1 = arith.constant 0 : i32
    return %arg0, %c0_i32, %c0_i32_0 : i32, i32, i32
  }
}

</mosaic_0001>

<bundles_post_ra>
// kernel: tpu_custom_call.1
= control target key start
LH: loop header
LB: loop body
LE: loop exit
PB: predicated region body
PF: predicated region fallthrough
CT: control target
= control target key end

     0   :  { %10 = vsyncpa [#allocation3], 0  ;;  %s928_s0 = inlined_call_operand.hbm [shape: f32[2,32,256], index: 0, kind: input, shape index: {}]   ;;  %s929_s1 = inlined_call_operand.vmem [shape: f32[32,2], index: 1, kind: input, shape index: {}]   ;;  %s930_s2 = inlined_call_operand.vmem [shape: f32[1,2], index: 2, kind: input, shape index: {}]   ;;  %s931_s3 = inlined_call_operand.vmem [shape: f32[32,2], index: 3, kind: input, shape index: {}]   ;;  %s932_s4 = inlined_call_operand.vmem [shape: f32[32,1], index: 4, kind: input, shape index: {}]   ;;  %s933_s5 = inlined_call_operand.hbm [shape: f32[2,32,256], index: 5, kind: output, shape index: {}]  }
   0x1   :  { %12 = vsyncpa [#allocation3 + $0x1], 0 }
   0x2   :  { %13 = vsyncpa [#allocation4], 0 }
   0x3   :  { %15 = vsyncpa [#allocation4 + $0x1], 0  ;;  %s691_s18 = smov 0   ;;  %s693_s19 = smov 0  }
   0x4   :  { %s695_s20 = smov 0   ;;  %s697_s21 = smov 0  }
   0x5 LB: > { %s712_s22 = sadd.s32 4294967295, %s652_s21   ;;  %s471_s23 = sadd.s32 4294967294, %s652_s21   ;;  %s652_s21 = sphi %s697_s21, %s948_s21   ;;  %s648_s20 = sphi %s695_s20, %s947_s20   ;;  %s644_s19 = sphi %s693_s19, %s946_s19   ;;  %s640_s18 = sphi %s691_s18, %s945_s18  }
   0x6   : > { %s716_s24 = sadd.s32 1, %s652_s21   ;;  %s28_s25 = sadd.s32 1, %s648_s20 }
   0x7   : > { %s25_s26 = ssub.s32 %s652_s21, %s716_s24  ;;  %p35_p0 = scmp.ne.s32.totalorder %s648_s20, %s644_s19 }
   0x8   : > { %p26_p1 = scmp.eq.s32.totalorder %s25_s26, 0  ;;  %p36_p2 = scmp.eq.s32.totalorder %s652_s21, 0 }
   0x9   : > { %p41_p3 = scmp.ne.s32.totalorder %s644_s19, %s640_s18  ;;  %p42_p4 = scmp.eq.s32.totalorder %s712_s22, 0 }
   0xa   : > { %s728_s27 = scalar_select %p26_p1, %s648_s20, %s28_s25  }
   0xb   : > { %p730_p5 = por %p36_p2, %p35_p0  ;;  %p734_p6 = por %p42_p4, %p41_p3 }
   0xc   : > { %p149_p7 = scmp.eq.s32.totalorder %s712_s22, 1  ;;  %p155_p8 = scmp.eq.s32.totalorder %s471_s23, 1 }
   0xd   : > { %s937_s29 = scalar_select %p734_p6, 1, 0 }
   0xe   : > { %p503_p10 = scmp.lt.s32.totalorder %s652_s21, 2  ;;  %p741_p11 = por %p149_p7, %p35_p0 }
   0xf   : > { %p745_p12 = por %p155_p8, %p41_p3  ;;  %s187_s7 = sand.u32 1, %s648_s20  }
  0x10   : > { %s938_s30 = scalar_select %p741_p11, 1, 0 }
  0x11   : > { %s939_s6 = scalar_select %p745_p12, 1, 0 }
  0x12   : > { %s489_s8 = sshll.u32 %s652_s21, 10  ;;  %s474_s9 = sshll.u32 %s187_s7, 6 }
  0x13   : > { %s754_s12 = scalar_lea.hbm %s928_s0, %s489_s8  ;;  %s191_s13 = scalar_lea.vmem [#allocation2], %s474_s9 }
  0x14   : > { %s198_s14 = sshll.u32 %s191_s13, 4  ;;  %p758_p13 = pnand %p503_p10, %p730_p5  ;;  %s762_s14 = int_to_ptr.vmem [resolvable:$true] %s198_s14 }
  0x15   : > { %s764_s16 = scalar_lea.sflag [#allocation3], %s187_s7  ;;  %s560_s17 = scalar_lea.hbm %s754_s12, 1024 }
  0x16   : > { %p561_p0 = scmp.ne.s32.totalorder %s754_s12, %s560_s17  ;;  %p562_p1 = pneg %p758_p13 }
  0x17   : > { %s565_s26 = scalar_lea.hbm %s928_s0, 2048  ;;  %p566_p4 = scmp.lt.s32.totalorder %s754_s12, %s928_s0 }
  0x18   : > { %p563_p2 = pnand %p562_p1, %p561_p0  ;;  %p567_p5 = scmp.lt.s32.totalorder %s565_s26, %s560_s17 }
  0x1a   : > { %p564_p3 = pneg %p563_p2  ;;  %p568_p7 = por %p567_p5, %p566_p4 }
  0x1c   : > { %p569_p8 = pnand %p568_p7, %p564_p3 }
  0x1e   : > { %572 = shalt.err (!%p569_p8)
}
  0x1f   : > { %s573_s7 = scalar_lea.vmem %s762_s14, 1024  ;;  %s654_s9 = smov [#allocation2]  }
  0x20   : > { %p574_p10 = scmp.ne.s32.totalorder %s762_s14, %s573_s7  ;;  %s578_s10 = sshll.u32 %s654_s9, 4  ;;  %s579_s10 = int_to_ptr.vmem [resolvable:$false] %s578_s10 }
  0x21   : > { %s580_s11 = scalar_lea.vmem %s579_s10, 2048  ;;  %p581_p2 = scmp.lt.s32.totalorder %s762_s14, %s579_s10 }
  0x22   : > { %p576_p9 = pnand %p574_p10, %p562_p1  ;;  %p582_p12 = scmp.lt.s32.totalorder %s580_s11, %s573_s7 }
  0x24   : > { %p577_p0 = pneg %p576_p9  ;;  %p583_p11 = por %p582_p12, %p581_p2 }
  0x26   : > { %p584_p6 = pnand %p583_p11, %p577_p0 }
  0x28   : > { %587 = shalt.err (!%p584_p6)
}
  0x29   : > { %s655_s13 = smov 256   ;;  %s656_s17 = smov 16  }
  0x2a   : > { %498 = dma.hbm_to_vmem [thread:$0]  (!%p758_p13), %s754_s12, 1024, %s762_s14, %s764_s16, %s655_s13, %s655_s13, %s656_s17  }
  0x2b   : > { %p477_p9 = scmp.ge.s32.totalorder %s652_s21, 1  ;;  %p206_p1 = scmp.lt.s32.totalorder %s652_s21, 3 }
  0x2d   : > { %p207_p3 = pnand %p477_p9, %p206_p1 }
  0x2e   : > { %s788_s23 = sand.u32 (!%p207_p3), 1, %s644_s19   ;;  %p941_p6 = scmp.ne.s32.totalorder (!%p207_p3), %s937_s29, 0 }
  0x2f   : > { %210 = sbr.rel (%p207_p3) target bundleno = 551 (0x227), region = 40  ;;  %s478_s25 = sshll.u32 (!%p207_p3), %s788_s23, 6 }
  0x30   : > { %s213_s26 = scalar_lea.sflag (!%p207_p3), [#allocation3], %s788_s23  ;;  %s216_s28 = scalar_lea.vmem (!%p207_p3), [#allocation2], %s478_s25 }
  0x34   : > { %631 = dma.done.wait (%p941_p6), %s213_s26, 1024  }
  0x35   : > { %633 = vsyncadd (%p941_p6), %s213_s26, 4294966272  ;;  %v798_v0 = vld [vmem:[%s216_s28] sm:$0xff]  ;;  %v800_v1 = vld [vmem:[%s216_s28 + $0x8] sm:$0xff]  ;;  %vm284_vm0 = vcmask 15360   ;;  %v300_v38 = vlaneseq  ;;  %v657_v60 = vmov 0   ;;  %s242_s26 = scalar_lea.vmem [#allocation5], %s478_s25 }
  0x36   : > { %v802_v2 = vld [vmem:[%s216_s28 + $0x20] sm:$0xff]  ;;  %v251_v3 = vadd.f32 %v800_v1, %v798_v0  ;;  %v806_v4 = vld [vmem:[%s216_s28 + $0x28] sm:$0xff]  ;;  %v808_v5 = vld [vmem:[%s216_s28 + $0x10] sm:$0xff]  ;;  %543 = vset.pattern.permute.xlu1 %v657_v60  ;;  %542 = vset.pattern.permute.xlu0 %v657_v60  ;;  %s490_s29 = sshll.u32 %s712_s22, 10  ;;  %s385_s22 = scalar_lea.sflag [#allocation4], %s788_s23 }
  0x37   : > { %v810_v6 = vld [vmem:[%s216_s28 + $0x18] sm:$0xff]  ;;  %v257_v7 = vadd.f32 %v806_v4, %v802_v2  ;;  %v814_v8 = vld [vmem:[%s216_s28 + $0x30] sm:$0xff]  ;;  %v267_v15 = vld [vmem:[%s929_s1] sm:$0xff]  ;;  %v301_v41 = vshrl.u32 %v300_v38, 7  ;;  %s883_s14 = scalar_lea.hbm %s933_s5, %s490_s29  ;;  %p942_p12 = scmp.ne.s32.totalorder %s938_s30, 0 }
  0x38   : > { %v816_v9 = vld [vmem:[%s216_s28 + $0x38] sm:$0xff]  ;;  %252 = vadd.xlane.f32.xlu0 %v251_v3  ;;  %v254_v10 = vadd.f32 %v810_v6, %v808_v5  ;;  %v269_v17 = vld [vmem:[%s929_s1 + $0x10] sm:$0xff]  ;;  %v268_v18 = vld [vmem:[%s929_s1 + $0x8] sm:$0xff]  ;;  %s398_s28 = sshll.u32 %s242_s26, 4  ;;  %s658_s16 = smov [#allocation5]   ;;  %s878_s28 = int_to_ptr.vmem [resolvable:$true] %s398_s28 }
  0x39   : > { %258 = vadd.xlane.f32.xlu1 %v257_v7  ;;  %v260_v11 = vadd.f32 %v816_v9, %v814_v8  ;;  %v270_v22 = vld [vmem:[%s929_s1 + $0x18] sm:$0xff]  ;;  %v271_v42 = vld [vmem:[%s930_s2] sm:$0x1]  ;;  %v302_v45 = vsub.s32 0, %v301_v41  ;;  %v273_v47 = vld [vmem:[%s931_s3 + $0x8] sm:$0xff]  ;;  %s588_s15 = scalar_lea.vmem %s878_s28, 1024 }
  0x3a   : > { %v272_v48 = vld [vmem:[%s931_s3] sm:$0xff]  ;;  %v275_v50 = vld [vmem:[%s931_s3 + $0x18] sm:$0xff]  ;;  %v274_v51 = vld [vmem:[%s931_s3 + $0x10] sm:$0xff]  ;;  %p589_p11 = scmp.ne.s32.totalorder %s878_s28, %s588_s15  ;;  %s592_s8 = sshll.u32 %s658_s16, 4  ;;  %s593_s8 = int_to_ptr.vmem [resolvable:$false] %s592_s8 }
  0x3b   : > { %v277_v61 = vld [vmem:[%s932_s4 + $0x8] sm:$0xff]  ;;  %v276_v62 = vld [vmem:[%s932_s4] sm:$0xff]  ;;  %s594_s7 = scalar_lea.vmem %s593_s8, 2048  ;;  %p595_p5 = scmp.lt.s32.totalorder %s878_s28, %s593_s8 }
  0x3c   : > { %255 = vadd.xlane.f32.xlu0 %v254_v10  ;;  %p590_p13 = pnand %p589_p11, %p942_p12  ;;  %p596_p7 = scmp.lt.s32.totalorder %s594_s7, %s588_s15 }
  0x3d   : > { %261 = vadd.xlane.f32.xlu1 %v260_v11  ;;  %v279_v11 = vld [vmem:[%s932_s4 + $0x18] sm:$0xff] }
  0x3e   : > { %p591_p4 = pneg %p590_p13  ;;  %p597_p8 = por %p596_p7, %p595_p5 }
  0x40   : > { %p598_p10 = pnand %p597_p8, %p591_p4 }
  0xc1   : > { %v253_v12 = vpop.xlane.xlu0 %252 }
  0xc2   : > { %v263_v13 = vmul.f32 0.00390625, %v253_v12  ;;  %v259_v14 = vpop.xlane.xlu1 %258  ;;  %v278_v12 = vld [vmem:[%s932_s4 + $0x10] sm:$0xff] }
  0xc3   : > { %v265_v16 = vmul.f32 0.00390625, %v259_v14 }
  0xc4   : > { %v280_v20 = vmul.f32 %v267_v15, %v263_v13 }
  0xc5   : > { %v256_v19 = vpop.xlane.xlu0 %255  ;;  %v282_v25 = vmul.f32 %v269_v17, %v265_v16 }
  0xc6   : > { %v264_v21 = vmul.f32 0.00390625, %v256_v19  ;;  %v262_v23 = vpop.xlane.xlu1 %261  ;;  %v285_v28 = vsel %vm284_vm0, %v280_v20, 0.0 }
  0xc7   : > { %v266_v24 = vmul.f32 0.00390625, %v262_v23  ;;  %v288_v31 = vsel %vm284_vm0, %v282_v25, 0.0 }
  0xc8   : > { %v281_v26 = vmul.f32 %v268_v18, %v264_v21 }
  0xc9   : > { %v283_v27 = vmul.f32 %v270_v22, %v266_v24 }
  0xca   : > { %v286_v29 = vsel %vm284_vm0, %v281_v26, 0.0 }
  0xcb   : > { %v287_v30 = vadd.f32 %v286_v29, %v285_v28  ;;  %v290_v32 = vsel %vm284_vm0, %v283_v27, 0.0 }
  0xcd   : > { %v289_v33 = vadd.f32 %v288_v31, %v287_v30 }
  0xcf   : > { %v291_v34 = vadd.f32 %v290_v32, %v289_v33 }
  0xd1   : > { %v292_v35 = vrot.slane %v291_v34, 4 }
  0xd3   : > { %v293_v36 = vadd.f32 %v292_v35, %v291_v34 }
  0xd5   : > { %v294_v37 = vrot.slane %v293_v36, 2 }
  0xd7   : > { %v295_v39 = vadd.f32 %v294_v37, %v293_v36 }
  0xd9   : > { %v296_v40 = vrot.slane %v295_v39, 1 }
  0xdb   : > { %v297_v43 = vadd.f32 %v296_v40, %v295_v39 }
  0xdd   : > { %v298_v44 = vadd.f32 %v297_v43, %v271_v42 }
  0xdf   : > { %v299_v46 = vmax.f32 %v298_v44, 0.0 }
  0xe1   : > { %v303_v49 = vrot.slane %v299_v46, %v302_v45 }
  0xe3   : > { %v305_v52 = vmul.f32 %v303_v49, %v273_v47  ;;  %v304_v53 = vmul.f32 %v303_v49, %v272_v48  ;;  %v307_v56 = vmul.f32 %v303_v49, %v275_v50  ;;  %v306_v57 = vmul.f32 %v303_v49, %v274_v51 }
  0xe5   : > { %v311_v54 = vsel %vm284_vm0, %v305_v52, 0.0  ;;  %v308_v55 = vsel %vm284_vm0, %v304_v53, 0.0  ;;  %v317_v58 = vsel %vm284_vm0, %v307_v56, 0.0  ;;  %v314_v59 = vsel %vm284_vm0, %v306_v57, 0.0 }
  0xe6   : > { %312 = vadd.xlane.f32.xlu1 %v311_v54  ;;  %309 = vadd.xlane.f32.xlu0 %v308_v55 }
  0xea   : > { %318 = vadd.xlane.f32.xlu1 %v317_v58  ;;  %315 = vadd.xlane.f32.xlu0 %v314_v59 }
 0x16f   : > { %v313_v63 = vpop.xlane.xlu1 %312  ;;  %v310_v3 = vpop.xlane.xlu0 %309 }
 0x170   : > { %v321_v7 = vadd.f32 %v313_v63, %v277_v61  ;;  %v320_v10 = vadd.f32 %v310_v3, %v276_v62 }
 0x172   : > { %v481_v13 = vmul.f32 -1.442695, %v321_v7  ;;  %v480_v14 = vmul.f32 -1.442695, %v320_v10 }
 0x173   : > { %v319_v15 = vpop.xlane.xlu1 %318  ;;  %v316_v16 = vpop.xlane.xlu0 %315 }
 0x174   : > { %544 = vpow2.f32 %v481_v13  ;;  %v323_v17 = vadd.f32 %v319_v15, %v279_v11  ;;  %v322_v18 = vadd.f32 %v316_v16, %v278_v12 }
 0x175   : > { %546 = vpow2.f32 %v480_v14 }
 0x176   : > { %v483_v19 = vmul.f32 -1.442695, %v323_v17  ;;  %v482_v20 = vmul.f32 -1.442695, %v322_v18 }
 0x178   : > { %548 = vpow2.f32 %v483_v19 }
 0x179   : > { %550 = vpow2.f32 %v482_v20 }
 0x181   : > { %v545_v21 = vpop.eup %544 }
 0x182   : > { %v547_v22 = vpop.eup %546  ;;  %v337_v23 = vadd.f32 1.0, %v545_v21 }
 0x183   : > { %v336_v24 = vadd.f32 1.0, %v547_v22 }
 0x184   : > { %552 = vrcp.f32 %v337_v23 }
 0x185   : > { %v549_v25 = vpop.eup %548  ;;  %554 = vrcp.f32 %v336_v24 }
 0x186   : > { %v551_v26 = vpop.eup %550  ;;  %v339_v28 = vadd.f32 1.0, %v549_v25 }
 0x187   : > { %v338_v27 = vadd.f32 1.0, %v551_v26 }
 0x189   : > { %556 = vrcp.f32 %v338_v27 }
 0x18a   : > { %558 = vrcp.f32 %v339_v28 }
 0x191   : > { %v553_v29 = vpop.eup %552 }
 0x192   : > { %v555_v30 = vpop.eup %554  ;;  %355 = vperm.xlu1 %543, %v553_v29  }
 0x193   : > { %350 = vperm.xlu0 %542, %v555_v30  }
 0x196   : > { %v557_v31 = vpop.eup %556 }
 0x197   : > { %360 = vperm.xlu1 %543, %v557_v31   ;;  %v559_v32 = vpop.eup %558 }
 0x19b   : > { %365 = vperm.xlu1 %543, %v559_v32  }
 0x20d   : > { %v356_v33 = vpop.permute.xlu1 %355 }
 0x20e   : > { %v370_v34 = vmul.f32 %v356_v33, %v808_v5  ;;  %v371_v35 = vmul.f32 %v356_v33, %v810_v6  ;;  %v351_v36 = vpop.permute.xlu0 %350 }
 0x20f   : > { %v368_v37 = vmul.f32 %v351_v36, %v798_v0  ;;  %v369_v38 = vmul.f32 %v351_v36, %v800_v1 }
 0x210   : > { %378 = vst [vmem:[%s242_s26 + $0x10] sm:$0xff] %v370_v34  ;;  %379 = vst [vmem:[%s242_s26 + $0x18] sm:$0xff] %v371_v35 }
 0x211   : > { %376 = vst [vmem:[%s242_s26] sm:$0xff] %v368_v37  ;;  %377 = vst [vmem:[%s242_s26 + $0x8] sm:$0xff] %v369_v38 }
 0x212   : > { %v361_v39 = vpop.permute.xlu1 %360 }
 0x213   : > { %v372_v40 = vmul.f32 %v361_v39, %v802_v2  ;;  %v373_v5 = vmul.f32 %v361_v39, %v806_v4 }
 0x215   : > { %380 = vst [vmem:[%s242_s26 + $0x20] sm:$0xff] %v372_v40  ;;  %381 = vst [vmem:[%s242_s26 + $0x28] sm:$0xff] %v373_v5 }
 0x216   : > { %v366_v0 = vpop.permute.xlu1 %365 }
 0x217   : > { %v374_v1 = vmul.f32 %v366_v0, %v814_v8  ;;  %v375_v2 = vmul.f32 %v366_v0, %v816_v9 }
 0x219   : > { %382 = vst [vmem:[%s242_s26 + $0x30] sm:$0xff] %v374_v1  ;;  %383 = vst [vmem:[%s242_s26 + $0x38] sm:$0xff] %v375_v2 }
 0x21a   : > { %601 = shalt.err (!%p598_p10)
}
 0x21b   : > { %s602_s9 = scalar_lea.hbm %s883_s14, 1024  ;;  %s606_s13 = scalar_lea.hbm %s933_s5, 2048 }
 0x21c   : > { %p603_p0 = scmp.ne.s32.totalorder %s883_s14, %s602_s9  ;;  %p607_p1 = scmp.lt.s32.totalorder %s883_s14, %s933_s5 }
 0x21d   : > { %p608_p3 = scmp.lt.s32.totalorder %s606_s13, %s602_s9 }
 0x21e   : > { %p604_p2 = pnand %p603_p0, %p942_p12 }
 0x21f   : > { %p609_p6 = por %p608_p3, %p607_p1 }
 0x220   : > { %p605_p9 = pneg %p604_p2 }
 0x222   : > { %p610_p11 = pnand %p609_p6, %p605_p9 }
 0x224   : > { %613 = shalt.err (!%p610_p11)
}
 0x225   : > { %s659_s29 = smov 256   ;;  %s660_s25 = smov 16  }
 0x226   : > { %493 = dma.vmem_to_hbm [thread:$0]  (%p942_p12), %s878_s28, 1024, %s883_s14, %s385_s22, %s659_s29, %s659_s29, %s660_s25  }
 0x227 PF: > { %s413_s12 = sand.u32 1, %s640_s18   ;;  %p943_p13 = scmp.ne.s32.totalorder %s939_s6, 0 }
 0x228   : > { %p944_p4 = scmp.ge.s32.totalorder %s652_s21, 2  ;;  %s414_s15 = scalar_lea.sflag [#allocation4], %s413_s12 }
 0x22a   : > { %p500_p5 = pnand %p944_p4, %p943_p13 }
 0x22c   : > { %p501_p7 = pneg %p500_p5 }
 0x22e   : > { %635 = dma.done.wait (%p501_p7), %s414_s15, 1024  }
 0x22f   : > { %637 = vsyncadd (%p501_p7), %s414_s15, 4294966272  ;;  %p18_p8 = scmp.ge.s32.totalorder %s716_s24, 4   ;;  %s945_s18 = smov %s644_s19 }
 0x230   : > { %s946_s19 = smov %s648_s20  ;;  %s947_s20 = smov %s728_s27 }
 0x231   : > { %s948_s21 = smov %s716_s24  ;;  %20 = sbr.rel (!%p18_p8) target bundleno = 5 (0x5), region = 85 }
 0x236   :  { %419 = vsyncpa [#allocation3], 1 }
 0x237   :  { %421 = vsyncpa [#allocation3 + $0x1], 1 }
 0x238   :  { %422 = vsyncpa [#allocation4], 1 }
 0x239   :  { %424 = vsyncpa [#allocation4 + $0x1], 1 }

</bundles_post_ra>
